<compile_context>
chip_gen: v6e
topology: v6e:2x2x1
jax: 0.10.0
libtpu: 0.0.40
codegen_flags: <defaults>
</compile_context>

<pallas_src>
import jax
import jax.numpy as jnp
from jax import lax
from jax.experimental import pallas as pl
from jax.experimental.pallas import tpu as pltpu


def _round_up(x, m):
    return (x + m - 1) // m * m


def textcnn_kernel(ids_ref, emb_ref, wconv_ref, bconv_ref, mask_ref,
                   wfc_ref, bfc_ref, out_ref):
    """Fused TextCNN forward for one batch tile.

    ids_ref  : (TB*L_emb, 1)     int32 token ids (time padded, pad id = 0)
    emb_ref  : (Vp, E)           bf16 embedding table (rows >= V zeroed)
    wconv_ref: (max_k*E, FPp)    bf16 lane-packed conv weights (branch i in
                                 lanes [i*F,(i+1)*F); rows >= k_i*E zeroed)
    bconv_ref: (1, FPp)          f32 lane-packed conv bias
    mask_ref : (1, L_p, FPp)     f32 lane-dependent valid-time mask
    wfc_ref  : (FPp, Cp)         bf16 packed fc weight (fc_w.T, padded rows zero)
    bfc_ref  : (1, Cp)           f32 fc bias
    out_ref  : (TB, Cp)          f32 logits (padded classes sliced off outside)
    """
    Vp, E = emb_ref.shape
    KE, FPp = wconv_ref.shape
    max_k = KE // E
    L_p = mask_ref.shape[1]
    TB = out_ref.shape[0]
    NL = ids_ref.shape[0]                       # TB * L_emb
    L_emb = NL // TB

    # --- Embedding gather fused in-kernel: one-hot @ table on the MXU. ---
    ids = ids_ref[...]                                               # (NL, 1) i32
    onehot = jnp.where(
        ids == lax.broadcasted_iota(jnp.int32, (NL, Vp), 1),
        1.0, 0.0).astype(jnp.bfloat16)                               # (NL, Vp)
    emb = jnp.dot(onehot, emb_ref[...],
                  preferred_element_type=jnp.float32)                # (NL, E)
    emb = emb.reshape(TB, L_emb, E).astype(jnp.bfloat16)             # exact (one-hot)

    # --- Shared bf16 im2col; taps beyond k_i hit zero weight rows. ---
    # (Shifted slices + concat; pltpu.roll-based shifts are a possible follow-up.)
    patches = jnp.concatenate(
        [emb[:, j:j + L_p, :] for j in range(max_k)], axis=-1)       # (TB, L_p, KE)
    patches = patches.reshape(TB * L_p, KE)

    # --- Single lane-packed conv matmul for ALL branches + bias + ReLU. ---
    conv = jnp.dot(patches, wconv_ref[...],
                   preferred_element_type=jnp.float32)               # (TB*L_p, FPp)
    conv = jnp.maximum(conv + bconv_ref[...], 0.0).reshape(TB, L_p, FPp)

    # --- Lane-dependent valid-time mask + global max pool (ReLU >= 0 so 0-mask is safe). ---
    pooled = jnp.max(conv * mask_ref[...], axis=1)                   # (TB, FPp)

    # --- Packed FC over all branches at once. ---
    out_ref[...] = jnp.dot(pooled.astype(jnp.bfloat16), wfc_ref[...],
                           preferred_element_type=jnp.float32) + bfc_ref[...]


def _vmem_bytes(TB, L_emb, L_p, E, Vp, FPp, Cp, max_k):
    """Rough per-step VMEM working-set estimate (bytes)."""
    bf, f32, i32 = 2, 4, 4
    dma = 2 * (TB * L_emb * i32 + TB * Cp * f32)            # double-buffered I/O
    resident = 2 * (Vp * E * bf + max_k * E * FPp * bf + FPp * f32
                    + L_p * FPp * f32 + FPp * Cp * bf + Cp * f32)
    temps = (TB * L_emb * Vp * (i32 + bf)                   # iota/compare + one-hot
             + TB * L_emb * E * (f32 + bf)                  # gathered embeddings
             + TB * L_p * max_k * E * bf                    # im2col patches
             + 2 * TB * L_p * FPp * f32                     # conv + masked copy
             + TB * (FPp + Cp) * f32)
    return dma + resident + temps


def pack_params(params, filter_sizes, num_filters):
    """Convert PyTorch-layout params into the packed / padded kernel layout."""
    n = len(filter_sizes)
    max_k = max(filter_sizes)
    V, E = params["embedding"].shape
    F = num_filters
    C = params["fc_b"].shape[0]
    Vp = _round_up(V, 128)
    FPp = _round_up(n * F, 128)
    Cp = _round_up(C, 128)

    emb = jnp.zeros((Vp, E), jnp.float32).at[:V].set(params["embedding"])

    wconv = jnp.zeros((max_k * E, FPp), jnp.float32)
    bconv = jnp.zeros((1, FPp), jnp.float32)
    for i, k in enumerate(filter_sizes):
        w = params[f"conv{i}_w"]                                   # (F, E, k)
        w = jnp.transpose(w, (2, 1, 0)).reshape(k * E, F)          # row = j*E + e
        wconv = wconv.at[:k * E, i * F:(i + 1) * F].set(w)
        bconv = bconv.at[0, i * F:(i + 1) * F].set(params[f"conv{i}_b"])

    # FC: feature order matches torch.cat([branch 0, branch 1, ...]).
    wfc = jnp.zeros((FPp, Cp), jnp.float32).at[:n * F, :C].set(params["fc_w"].T)
    bfc = jnp.zeros((1, Cp), jnp.float32).at[0, :C].set(params["fc_b"])

    return {
        "embedding": emb.astype(jnp.bfloat16),
        "wconv": wconv.astype(jnp.bfloat16),
        "bconv": bconv,
        "wfc": wfc.astype(jnp.bfloat16),
        "bfc": bfc,
        "num_filters": F,
        "num_classes": C,
    }


def textcnn_forward(token_ids, packed, filter_sizes, *, batch_tile=256):
    B, L = token_ids.shape
    max_k = max(filter_sizes)
    assert L >= max_k, "seq_len must be >= largest filter size (Conv1d 'valid')"

    emb_table = packed["embedding"]                # (Vp, E) bf16
    Vp, E = emb_table.shape
    F = packed["num_filters"]
    FPp = packed["wconv"].shape[-1]
    Cp = packed["wfc"].shape[-1]
    C = packed["num_classes"]

    L_p = _round_up(L, 8)                          # padded conv-output length
    L_emb = _round_up(L_p + max_k - 1, 8)          # padded embedded length

    # Batch tile: big enough to amortize per-step overhead and feed the MXU with
    # M = TB*L_p rows; VMEM-aware shrink keeps the working set <~40 MiB so it
    # also fits v7x's 64 MiB VMEM/TC (v5e/v6e simply get more headroom).
    TB = min(batch_tile, _round_up(B, 8))
    TB = max(8, TB // 8 * 8)
    while TB > 8 and _vmem_bytes(TB, L_emb, L_p, E, Vp, FPp, Cp, max_k) > 40 * 2**20:
        TB = max(8, (TB // 2) // 8 * 8)
    B_pad = _round_up(B, TB)

    # Token ids only (4 B/token) go to the kernel; embedding gather is fused.
    ids = jnp.pad(token_ids.astype(jnp.int32),
                  ((0, B_pad - B), (0, L_emb - L)))                # pad id = 0 (masked)
    ids = ids.reshape(B_pad * L_emb, 1)

    # Lane-dependent valid-time mask: lane i*F+f is valid for t < L - k_i + 1;
    # padded filter lanes stay fully masked.
    lane_lout = jnp.zeros((FPp,), jnp.int32)
    for i, k in enumerate(filter_sizes):
        lane_lout = lane_lout.at[i * F:(i + 1) * F].set(L - k + 1)
    mask = (jnp.arange(L_p)[None, :, None]
            < lane_lout[None, None, :]).astype(jnp.float32)        # (1, L_p, FPp)

    est = _vmem_bytes(TB, L_emb, L_p, E, Vp, FPp, Cp, max_k)
    vmem_limit = int(min(max(2 * est, 16 * 2**20), 48 * 2**20))

    out = pl.pallas_call(
        textcnn_kernel,
        out_shape=jax.ShapeDtypeStruct((B_pad, Cp), jnp.float32),
        grid=(B_pad // TB,),
        in_specs=[
            pl.BlockSpec((TB * L_emb, 1), lambda b: (b, 0)),        # token ids
            pl.BlockSpec((Vp, E), lambda b: (0, 0)),                # embedding table
            pl.BlockSpec((max_k * E, FPp), lambda b: (0, 0)),       # packed conv weight
            pl.BlockSpec((1, FPp), lambda b: (0, 0)),               # packed conv bias
            pl.BlockSpec((1, L_p, FPp), lambda b: (0, 0, 0)),       # time mask
            pl.BlockSpec((FPp, Cp), lambda b: (0, 0)),              # packed fc weight
            pl.BlockSpec((1, Cp), lambda b: (0, 0)),                # fc bias
        ],
        out_specs=pl.BlockSpec((TB, Cp), lambda b: (b, 0)),
        compiler_params=pltpu.CompilerParams(
            dimension_semantics=("parallel",),
            vmem_limit_bytes=vmem_limit,
        ),
    )(ids, emb_table, packed["wconv"], packed["bconv"], mask,
      packed["wfc"], packed["bfc"])

    return out[:B, :C]


def init_params(key, filter_sizes, num_classes, vocab_size, num_filters, emb_dim):
    """Deterministic synthetic params in PyTorch layouts."""
    keys = jax.random.split(key, 2 * len(filter_sizes) + 3)
    params = {
        "embedding": 0.02 * jax.random.normal(
            keys[0], (vocab_size, emb_dim), jnp.float32)
    }
    for i, k in enumerate(filter_sizes):
        params[f"conv{i}_w"] = 0.1 * jax.random.normal(
            keys[1 + 2 * i], (num_filters, emb_dim, k), jnp.float32)   # (F, E, k)
        params[f"conv{i}_b"] = 0.1 * jax.random.normal(
            keys[2 + 2 * i], (num_filters,), jnp.float32)
    in_feat = num_filters * len(filter_sizes)
    params["fc_w"] = 0.1 * jax.random.normal(
        keys[-2], (num_classes, in_feat), jnp.float32)                 # (C, n*F)
    params["fc_b"] = 0.1 * jax.random.normal(keys[-1], (num_classes,), jnp.float32)
    return params


def reference_forward(token_ids, params, filter_sizes):
    """Pure-JAX reference mirroring the kernel's bf16 casts (f32 accumulation)."""
    bf = lambda a: a.astype(jnp.bfloat16).astype(jnp.float32)
    emb = bf(jnp.take(params["embedding"], token_ids, axis=0))     # (B, L, E)
    B, L, _ = emb.shape
    pooled_all = []
    for i, k in enumerate(filter_sizes):
        w = bf(params[f"conv{i}_w"])                               # (F, E, k)
        b = params[f"conv{i}_b"]
        F = w.shape[0]
        lout = L - k + 1
        acc = jnp.zeros((B, lout, F), jnp.float32)
        for j in range(k):
            acc = acc + jnp.einsum("ble,fe->blf", emb[:, j:j + lout, :],
                                   w[:, :, j], precision=lax.Precision.HIGHEST)
        acc = jnp.maximum(acc + b[None, None, :], 0.0)
        pooled_all.append(jnp.max(acc, axis=1))
    feat = bf(jnp.concatenate(pooled_all, axis=1))                 # (B, n*F)
    wfc = bf(params["fc_w"])                                       # (C, n*F)
    return jnp.dot(feat, wfc.T, precision=lax.Precision.HIGHEST) + params["fc_b"][None, :]


if __name__ == "__main__":
    filter_sizes = (2, 3, 4)
    num_classes = 8
    vocab_size = 50
    num_filters = 16
    emb_dim = 32
    batch = 2
    seq_len = 16

    key = jax.random.PRNGKey(0)
    pkey, xkey = jax.random.split(key)
    params = init_params(
        pkey, filter_sizes, num_classes, vocab_size, num_filters, emb_dim)
    x = jax.random.randint(xkey, (batch, seq_len), 0, vocab_size, dtype=jnp.int32)

    packed = pack_params(params, filter_sizes, num_filters)
    out = textcnn_forward(x, packed, filter_sizes)
    out = jax.block_until_ready(out)

    ref = reference_forward(x, params, filter_sizes)

    assert out.shape == (batch, num_classes), out.shape
    assert jnp.allclose(out, ref, atol=1e-2, rtol=1e-2), (out, ref)
    print("KERNEL_OK")
</pallas_src>

<mosaic_0001>
module attributes {stable_mosaic.version = 11 : i64} {
  func.func @textcnn_kernel(%arg0: i32, %arg1: memref<192x1xi32, #tpu.memory_space<vmem>>, %arg2: memref<128x32xbf16, #tpu.memory_space<vmem>>, %arg3: memref<128x128xbf16, #tpu.memory_space<vmem>>, %arg4: memref<1x128xf32, #tpu.memory_space<vmem>>, %arg5: memref<1x16x128xf32, #tpu.memory_space<vmem>>, %arg6: memref<128x128xbf16, #tpu.memory_space<vmem>>, %arg7: memref<1x128xf32, #tpu.memory_space<vmem>>, %arg8: memref<8x128xf32, #tpu.memory_space<vmem>>) attributes {dimension_semantics = [#tpu.dimension_semantics<parallel>], iteration_bounds = array<i64: 1>, scalar_prefetch = 0 : i64, scratch_operands = 0 : i64, tpu.core_type = #tpu.core_type<tc>, window_params = [{transform_indices = @transform_0, window_bounds = array<i64: 192, 1>}, {pipeline_mode = #tpu.pipeline_mode<synchronous>, transform_indices = @transform_1, window_bounds = array<i64: 128, 32>}, {pipeline_mode = #tpu.pipeline_mode<synchronous>, transform_indices = @transform_2, window_bounds = array<i64: 128, 128>}, {pipeline_mode = #tpu.pipeline_mode<synchronous>, transform_indices = @transform_3, window_bounds = array<i64: 1, 128>}, {pipeline_mode = #tpu.pipeline_mode<synchronous>, transform_indices = @transform_4, window_bounds = array<i64: 1, 16, 128>}, {pipeline_mode = #tpu.pipeline_mode<synchronous>, transform_indices = @transform_5, window_bounds = array<i64: 128, 128>}, {pipeline_mode = #tpu.pipeline_mode<synchronous>, transform_indices = @transform_6, window_bounds = array<i64: 1, 128>}, {transform_indices = @transform_7, window_bounds = array<i64: 8, 128>}]} {
    %c0 = arith.constant 0 : index
    %c0_0 = arith.constant 0 : index
    %0 = vector.load %arg1[%c0, %c0_0] : memref<192x1xi32, #tpu.memory_space<vmem>>, vector<192x1xi32>
    %1 = tpu.iota {dimensions = array<i32: 1>} : vector<192x128xi32>
    %2 = vector.broadcast %0 : vector<192x1xi32> to vector<192x128xi32>
    %3 = arith.cmpi eq, %2, %1 : vector<192x128xi32>
    %cst = arith.constant 1.000000e+00 : f32
    %cst_1 = arith.constant 0.000000e+00 : f32
    %4 = vector.broadcast %cst : f32 to vector<192x128xf32>
    %5 = vector.broadcast %cst_1 : f32 to vector<192x128xf32>
    %6 = arith.select %3, %4, %5 : vector<192x128xi1>, vector<192x128xf32>
    %7 = arith.truncf %6 : vector<192x128xf32> to vector<192x128xbf16>
    %c0_2 = arith.constant 0 : index
    %c0_3 = arith.constant 0 : index
    %8 = vector.load %arg2[%c0_2, %c0_3] : memref<128x32xbf16, #tpu.memory_space<vmem>>, vector<128x32xbf16>
    %cst_4 = arith.constant dense<0.000000e+00> : vector<192x32xf32>
    %9 = tpu.matmul %7, %8, %cst_4 {dimension_numbers = #tpu.dot_dimension_numbers<[1], [0], [0], [1], [0, 0, 1, 1], [], []>} : vector<192x128xbf16>, vector<128x32xbf16>, vector<192x32xf32> -> vector<192x32xf32>
    %10 = vector.shape_cast %9 : vector<192x32xf32> to vector<8x24x32xf32>
    %11 = arith.truncf %10 : vector<8x24x32xf32> to vector<8x24x32xbf16>
    %12 = vector.extract_strided_slice %11 {offsets = [0, 0, 0], sizes = [8, 16, 32], strides = [1, 1, 1]} : vector<8x24x32xbf16> to vector<8x16x32xbf16>
    %13 = vector.extract_strided_slice %11 {offsets = [0, 1, 0], sizes = [8, 16, 32], strides = [1, 1, 1]} : vector<8x24x32xbf16> to vector<8x16x32xbf16>
    %14 = vector.extract_strided_slice %11 {offsets = [0, 2, 0], sizes = [8, 16, 32], strides = [1, 1, 1]} : vector<8x24x32xbf16> to vector<8x16x32xbf16>
    %15 = vector.extract_strided_slice %11 {offsets = [0, 3, 0], sizes = [8, 16, 32], strides = [1, 1, 1]} : vector<8x24x32xbf16> to vector<8x16x32xbf16>
    %16 = tpu.concatenate %12, %13, %14, %15 in 2 : vector<8x16x32xbf16>, vector<8x16x32xbf16>, vector<8x16x32xbf16>, vector<8x16x32xbf16> -> vector<8x16x128xbf16>
    %17 = vector.shape_cast %16 : vector<8x16x128xbf16> to vector<128x128xbf16>
    %c0_5 = arith.constant 0 : index
    %c0_6 = arith.constant 0 : index
    %18 = vector.load %arg3[%c0_5, %c0_6] : memref<128x128xbf16, #tpu.memory_space<vmem>>, vector<128x128xbf16>
    %cst_7 = arith.constant dense<0.000000e+00> : vector<128x128xf32>
    %19 = tpu.matmul %17, %18, %cst_7 {dimension_numbers = #tpu.dot_dimension_numbers<[1], [0], [0], [1], [0, 0, 1, 1], [], []>} : vector<128x128xbf16>, vector<128x128xbf16>, vector<128x128xf32> -> vector<128x128xf32>
    %c0_8 = arith.constant 0 : index
    %c0_9 = arith.constant 0 : index
    %20 = vector.load %arg4[%c0_8, %c0_9] : memref<1x128xf32, #tpu.memory_space<vmem>>, vector<1x128xf32>
    %21 = vector.broadcast %20 : vector<1x128xf32> to vector<128x128xf32>
    %22 = arith.addf %19, %21 : vector<128x128xf32>
    %cst_10 = arith.constant 0.000000e+00 : f32
    %23 = vector.broadcast %cst_10 : f32 to vector<128x128xf32>
    %24 = arith.maximumf %22, %23 : vector<128x128xf32>
    %25 = vector.shape_cast %24 : vector<128x128xf32> to vector<8x16x128xf32>
    %c0_11 = arith.constant 0 : index
    %c0_12 = arith.constant 0 : index
    %c0_13 = arith.constant 0 : index
    %26 = vector.load %arg5[%c0_11, %c0_12, %c0_13] : memref<1x16x128xf32, #tpu.memory_space<vmem>>, vector<1x16x128xf32>
    %27 = vector.broadcast %26 : vector<1x16x128xf32> to vector<8x16x128xf32>
    %28 = arith.mulf %25, %27 : vector<8x16x128xf32>
    %cst_14 = arith.constant dense<0xFF800000> : vector<8x128xf32>
    %29 = vector.multi_reduction <maximumf>, %28, %cst_14 [1] : vector<8x16x128xf32> to vector<8x128xf32>
    %30 = arith.truncf %29 : vector<8x128xf32> to vector<8x128xbf16>
    %c0_15 = arith.constant 0 : index
    %c0_16 = arith.constant 0 : index
    %31 = vector.load %arg6[%c0_15, %c0_16] : memref<128x128xbf16, #tpu.memory_space<vmem>>, vector<128x128xbf16>
    %cst_17 = arith.constant dense<0.000000e+00> : vector<8x128xf32>
    %32 = tpu.matmul %30, %31, %cst_17 {dimension_numbers = #tpu.dot_dimension_numbers<[1], [0], [0], [1], [0, 0, 1, 1], [], []>} : vector<8x128xbf16>, vector<128x128xbf16>, vector<8x128xf32> -> vector<8x128xf32>
    %c0_18 = arith.constant 0 : index
    %c0_19 = arith.constant 0 : index
    %33 = vector.load %arg7[%c0_18, %c0_19] : memref<1x128xf32, #tpu.memory_space<vmem>>, vector<1x128xf32>
    %34 = vector.broadcast %33 : vector<1x128xf32> to vector<8x128xf32>
    %35 = arith.addf %32, %34 : vector<8x128xf32>
    %c0_20 = arith.constant 0 : index
    %c0_21 = arith.constant 0 : index
    %36 = vector.load %arg8[%c0_20, %c0_21] : memref<8x128xf32, #tpu.memory_space<vmem>>, vector<8x128xf32>
    tpu.vector_store %arg8[%c0_20, %c0_21], %35 {strides = array<i32>} : memref<8x128xf32, #tpu.memory_space<vmem>>, vector<8x128xf32>,
    return
  }
  func.func @transform_0(%arg0: i32) -> (i32, i32) {
    %c0_i32 = arith.constant 0 : i32
    %c0_i32_0 = arith.constant 0 : i32
    return %arg0, %c0_i32 : i32, i32
  }
  func.func @transform_1(%arg0: i32) -> (i32, i32) {
    %c0_i32 = arith.constant 0 : i32
    %c0_i32_0 = arith.constant 0 : i32
    %c0_i32_1 = arith.constant 0 : i32
    return %c0_i32, %c0_i32_0 : i32, i32
  }
  func.func @transform_2(%arg0: i32) -> (i32, i32) {
    %c0_i32 = arith.constant 0 : i32
    %c0_i32_0 = arith.constant 0 : i32
    %c0_i32_1 = arith.constant 0 : i32
    return %c0_i32, %c0_i32_0 : i32, i32
  }
  func.func @transform_3(%arg0: i32) -> (i32, i32) {
    %c0_i32 = arith.constant 0 : i32
    %c0_i32_0 = arith.constant 0 : i32
    %c0_i32_1 = arith.constant 0 : i32
    return %c0_i32, %c0_i32_0 : i32, i32
  }
  func.func @transform_4(%arg0: i32) -> (i32, i32, i32) {
    %c0_i32 = arith.constant 0 : i32
    %c0_i32_0 = arith.constant 0 : i32
    %c0_i32_1 = arith.constant 0 : i32
    %c0_i32_2 = arith.constant 0 : i32
    return %c0_i32, %c0_i32_0, %c0_i32_1 : i32, i32, i32
  }
  func.func @transform_5(%arg0: i32) -> (i32, i32) {
    %c0_i32 = arith.constant 0 : i32
    %c0_i32_0 = arith.constant 0 : i32
    %c0_i32_1 = arith.constant 0 : i32
    return %c0_i32, %c0_i32_0 : i32, i32
  }
  func.func @transform_6(%arg0: i32) -> (i32, i32) {
    %c0_i32 = arith.constant 0 : i32
    %c0_i32_0 = arith.constant 0 : i32
    %c0_i32_1 = arith.constant 0 : i32
    return %c0_i32, %c0_i32_0 : i32, i32
  }
  func.func @transform_7(%arg0: i32) -> (i32, i32) {
    %c0_i32 = arith.constant 0 : i32
    %c0_i32_0 = arith.constant 0 : i32
    return %arg0, %c0_i32 : i32, i32
  }
}

</mosaic_0001>

<bundles_post_ra>
// kernel: tpu_custom_call.1
= control target key start
LH: loop header
LB: loop body
LE: loop exit
PB: predicated region body
PF: predicated region fallthrough
CT: control target
= control target key end

     0   :  { %v1380_v2 = vmov 0   ;;  %s1771_s0 = inlined_call_operand.vmem [shape: s32[192,1], index: 0, kind: input, shape index: {}]   ;;  %s1772_s1 = inlined_call_operand.vmem [shape: bf16[128,32], index: 1, kind: input, shape index: {}]   ;;  %s1773_s2 = inlined_call_operand.vmem [shape: bf16[128,128], index: 2, kind: input, shape index: {}]   ;;  %s1774_s3 = inlined_call_operand.vmem [shape: f32[1,128], index: 3, kind: input, shape index: {}]   ;;  %s1775_s4 = inlined_call_operand.vmem [shape: f32[1,16,128], index: 4, kind: input, shape index: {}]   ;;  %s1776_s5 = inlined_call_operand.vmem [shape: bf16[128,128], index: 5, kind: input, shape index: {}]   ;;  %s1777_s6 = inlined_call_operand.vmem [shape: f32[1,128], index: 6, kind: input, shape index: {}]   ;;  %s1778_s7 = inlined_call_operand.hbm [shape: f32[8,128], index: 7, kind: output, shape index: {}]  }
   0x1   :  { %v30_v0 = vld [vmem:[%s1771_s0 + $0x10] sm:$0xff]  ;;  %v28_v1 = vld [vmem:[%s1771_s0] sm:$0xff]  ;;  %1333 = vset.pattern.permute.xlu1 %v1380_v2  ;;  %1332 = vset.pattern.permute.xlu0 %v1380_v2  ;;  %v31_v3 = vld [vmem:[%s1771_s0 + $0x18] sm:$0xff] }
   0x2   :  { %61 = vperm.xlu1 %1333, %v30_v0   ;;  %55 = vperm.xlu0 %1332, %v28_v1   ;;  %v29_v4 = vld [vmem:[%s1771_s0 + $0x8] sm:$0xff]  ;;  %v32_v6 = vld [vmem:[%s1771_s0 + $0x20] sm:$0xff]  ;;  %v1334_v7 = vld [vmem:[%s1772_s1 + $0x38] sm:$0xff]  }
   0x3   :  { %v33_v5 = vld [vmem:[%s1771_s0 + $0x28] sm:$0xff]  ;;  %v1335_v8 = vld [vmem:[%s1772_s1 + $0x30] sm:$0xff]   ;;  %v35_v9 = vld [vmem:[%s1771_s0 + $0x38] sm:$0xff]  ;;  %1232 = vmatprep.subr.bf16.mxu0 %v1334_v7 }
   0x4   :  { %v34_v10 = vld [vmem:[%s1771_s0 + $0x30] sm:$0xff]  ;;  %1233 = vmatpush3.bf16.msra.mxu0 %v1334_v7  ;;  %v37_v11 = vld [vmem:[%s1771_s0 + $0x48] sm:$0xff]  ;;  %v36_v13 = vld [vmem:[%s1771_s0 + $0x40] sm:$0xff] }
   0x5   :  { %1234 = vmatprep.subr.bf16.mxu0 %v1335_v8  ;;  %v1336_v12 = vld [vmem:[%s1772_s1 + $0x28] sm:$0xff]   ;;  %v1337_v14 = vld [vmem:[%s1772_s1 + $0x20] sm:$0xff]   ;;  %v39_v15 = vld [vmem:[%s1771_s0 + $0x58] sm:$0xff] }
   0x6   :  { %64 = vperm.xlu1 %1333, %v31_v3   ;;  %58 = vperm.xlu0 %1332, %v29_v4   ;;  %v38_v16 = vld [vmem:[%s1771_s0 + $0x50] sm:$0xff]  ;;  %v1338_v17 = vld [vmem:[%s1772_s1 + $0x18] sm:$0xff]   ;;  %v41_v18 = vld [vmem:[%s1771_s0 + $0x68] sm:$0xff] }
   0x7   :  { %v40_v19 = vld [vmem:[%s1771_s0 + $0x60] sm:$0xff]  ;;  %v1339_v20 = vld [vmem:[%s1772_s1 + $0x10] sm:$0xff]  }
   0x8   :  { %1235 = vmatpush3.bf16.msra.mxu0 %v1335_v8 }
   0x9   :  { %1236 = vmatprep.subr.bf16.mxu0 %v1336_v12 }
   0xa   :  { %70 = vperm.xlu1 %1333, %v33_v5   ;;  %67 = vperm.xlu0 %1332, %v32_v6  }
   0xc   :  { %1237 = vmatpush3.bf16.msra.mxu0 %v1336_v12 }
   0xd   :  { %1238 = vmatprep.subr.bf16.mxu0 %v1337_v14 }
   0xe   :  { %76 = vperm.xlu1 %1333, %v35_v9   ;;  %73 = vperm.xlu0 %1332, %v34_v10  }
  0x10   :  { %1239 = vmatpush3.bf16.msra.mxu0 %v1337_v14 }
  0x11   :  { %1240 = vmatprep.subr.bf16.mxu0 %v1338_v17 }
  0x12   :  { %82 = vperm.xlu1 %1333, %v37_v11   ;;  %79 = vperm.xlu0 %1332, %v36_v13  }
  0x16   :  { %88 = vperm.xlu1 %1333, %v39_v15   ;;  %85 = vperm.xlu0 %1332, %v38_v16  }
  0x1a   :  { %94 = vperm.xlu1 %1333, %v41_v18   ;;  %91 = vperm.xlu0 %1332, %v40_v19  }
  0x1b   :  { %12 = vsyncpa [#allocation3], 0  ;;  %v43_v21 = vld [vmem:[%s1771_s0 + $0x78] sm:$0xff]  ;;  %v42_v22 = vld [vmem:[%s1771_s0 + $0x70] sm:$0xff]  ;;  %1241 = vmatpush3.bf16.msra.mxu0 %v1338_v17  ;;  %v52_v33 = vlaneseq  ;;  %v1381_v39 = vmov 1.0|1.0  }
  0x1c   :  { %1242 = vmatprep.subr.bf16.mxu0 %v1339_v20  ;;  %v1340_v23 = vld [vmem:[%s1772_s1 + $0x8] sm:$0xff]   ;;  %v44_v25 = vld [vmem:[%s1771_s0 + $0x80] sm:$0xff]  ;;  %v47_v27 = vld [vmem:[%s1771_s0 + $0x98] sm:$0xff]  ;;  %s1382_s10 = smov 64   ;;  %s1384_s11 = smov 96  }
  0x1d   :  { %v45_v24 = vld [vmem:[%s1771_s0 + $0x88] sm:$0xff]  ;;  %v1341_v26 = vld [vmem:[%s1772_s1] sm:$0xff]   ;;  %v46_v28 = vld [vmem:[%s1771_s0 + $0x90] sm:$0xff]  ;;  %v1524_v36 = vand.u32 127, %v52_v33  ;;  %s1387_s8 = smov [#allocation2]  }
  0x1e   :  { %100 = vperm.xlu1 %1333, %v43_v21   ;;  %97 = vperm.xlu0 %1332, %v42_v22   ;;  %v49_v29 = vld [vmem:[%s1771_s0 + $0xa8] sm:$0xff]  ;;  %v48_v30 = vld [vmem:[%s1771_s0 + $0xa0] sm:$0xff]  ;;  %v51_v31 = vld [vmem:[%s1771_s0 + $0xb8] sm:$0xff]  ;;  %s1129_s9 = sshll.u32 %s1387_s8, 4  ;;  %s1130_s9 = int_to_ptr.vmem [resolvable:$true] %s1129_s9 }
  0x1f   :  { %1243 = vmatpush3.bf16.msra.mxu0 %v1339_v20  ;;  %v50_v32 = vld [vmem:[%s1771_s0 + $0xb0] sm:$0xff]  ;;  %v1342_v60 = vld [vmem:[%s1773_s2 + $0x38] sm:$0xff]   ;;  %v1344_v62 = vld [vmem:[%s1773_s2 + $0x28] sm:$0xff]   ;;  %p1363_p1 = scmp.lt.s32.totalorder %s1130_s9, %s1130_s9 }
  0x20   :  { %1244 = vmatprep.subr.bf16.mxu0 %v1340_v23  ;;  %v1343_v61 = vld [vmem:[%s1773_s2 + $0x30] sm:$0xff]   ;;  %1272 = vmatprep.subr.bf16.mxu1 %v1342_v60  ;;  %v1345_v63 = vld [vmem:[%s1773_s2 + $0x20] sm:$0xff]   ;;  %v1346_v0 = vld [vmem:[%s1773_s2 + $0x18] sm:$0xff]  }
  0x21   :  { %1273 = vmatpush3.bf16.msra.mxu1 %v1342_v60  ;;  %v1347_v3 = vld [vmem:[%s1773_s2 + $0x10] sm:$0xff]   ;;  %v1348_v7 = vld [vmem:[%s1773_s2 + $0x8] sm:$0xff]   ;;  %v1349_v21 = vld [vmem:[%s1773_s2] sm:$0xff]   ;;  %s1383_s2 = smov 32  }
  0x22   :  { %106 = vperm.xlu1 %1333, %v45_v24   ;;  %103 = vperm.xlu0 %1332, %v44_v25  }
  0x23   :  { %1245 = vmatpush3.bf16.msra.mxu0 %v1340_v23  ;;  %1274 = vmatprep.subr.bf16.mxu1 %v1343_v61 }
  0x24   :  { %1246 = vmatprep.subr.bf16.mxu0 %v1341_v26 }
  0x25   :  { %1275 = vmatpush3.bf16.msra.mxu1 %v1343_v61 }
  0x26   :  { %112 = vperm.xlu1 %1333, %v47_v27   ;;  %109 = vperm.xlu0 %1332, %v46_v28  }
  0x27   :  { %1247 = vmatpush3.bf16.msra.mxu0 %v1341_v26  ;;  %1276 = vmatprep.subr.bf16.mxu1 %v1344_v62 }
  0x29   :  { %1277 = vmatpush3.bf16.msra.mxu1 %v1344_v62 }
  0x2a   :  { %118 = vperm.xlu1 %1333, %v49_v29   ;;  %115 = vperm.xlu0 %1332, %v48_v30  }
  0x2b   :  { %1278 = vmatprep.subr.bf16.mxu1 %v1345_v63 }
  0x2d   :  { %1279 = vmatpush3.bf16.msra.mxu1 %v1345_v63 }
  0x2e   :  { %124 = vperm.xlu1 %1333, %v51_v31   ;;  %121 = vperm.xlu0 %1332, %v50_v32  }
  0x2f   :  { %1280 = vmatprep.subr.bf16.mxu1 %v1346_v0 }
  0x31   :  { %1281 = vmatpush3.bf16.msra.mxu1 %v1346_v0 }
  0x32   :  { %1282 = vmatprep.subr.bf16.mxu1 %v1347_v3 }
  0x35   :  { %1283 = vmatpush3.bf16.msra.mxu1 %v1347_v3 }
  0x36   :  { %1284 = vmatprep.subr.bf16.mxu1 %v1348_v7 }
  0x39   :  { %1285 = vmatpush3.bf16.msra.mxu1 %v1348_v7 }
  0x3a   :  { %1286 = vmatprep.subr.bf16.mxu1 %v1349_v21 }
  0x3d   :  { %1287 = vmatpush3.bf16.msra.mxu1 %v1349_v21 }
  0x7d   :  { %v62_v34 = vpop.permute.xlu1 %61  ;;  %v56_v35 = vpop.permute.xlu0 %55 }
  0x7e   :  { %vm128_vm0 = vcmp.eq.s32.totalorder %v62_v34, %v1524_v36  ;;  %vm126_vm3 = vcmp.eq.s32.totalorder %v56_v35, %v1524_v36 }
  0x81   :  { %v65_v37 = vpop.permute.xlu1 %64  ;;  %v59_v38 = vpop.permute.xlu0 %58 }
  0x82   :  { %vm129_vm1 = vcmp.eq.s32.totalorder %v65_v37, %v1524_v36  ;;  %vm127_vm2 = vcmp.eq.s32.totalorder %v59_v38, %v1524_v36 }
  0x83   :  { %vm1147_vm4 = vmpackc.low %vm129_vm1, %vm128_vm0 }
  0x84   :  { %vm1145_vm5 = vmpackc.low %vm127_vm2, %vm126_vm3 }
  0x85   :  { %1248 = vmatprep.mubr.msk.bf16.mxu0 %vm1145_vm5, %v1381_v39  ;;  %v71_v40 = vpop.permute.xlu1 %70  ;;  %v68_v41 = vpop.permute.xlu0 %67 }
  0x86   :  { %vm131_vm6 = vcmp.eq.s32.totalorder %v71_v40, %v1524_v36  ;;  %1249 = vmatmul.mubr.msk.bf16.vlgmr.msra.gmra.mxu0 %vm1147_vm4, %v1381_v39  ;;  %vm130_vm7 = vcmp.eq.s32.totalorder %v68_v41, %v1524_v36 }
  0x87   :  { %vm1149_vm8 = vmpackc.low %vm131_vm6, %vm130_vm7 }
  0x88   :  { %1252 = vmatprep.mubr.msk.bf16.mxu0 %vm1149_vm8, %v1381_v39 }
  0x89   :  { %v77_v42 = vpop.permute.xlu1 %76  ;;  %v74_v43 = vpop.permute.xlu0 %73 }
  0x8a   :  { %vm133_vm9 = vcmp.eq.s32.totalorder %v77_v42, %v1524_v36  ;;  %vm132_vm10 = vcmp.eq.s32.totalorder %v74_v43, %v1524_v36 }
  0x8b   :  { %vm1151_vm11 = vmpackc.low %vm133_vm9, %vm132_vm10 }
  0x8d   :  { %v83_v44 = vpop.permute.xlu1 %82  ;;  %v80_v45 = vpop.permute.xlu0 %79 }
  0x8e   :  { %vm135_vm12 = vcmp.eq.s32.totalorder %v83_v44, %v1524_v36  ;;  %1253 = vmatmul.mubr.msk.bf16.gmra.mxu0 %vm1151_vm11, %v1381_v39  ;;  %vm134_vm13 = vcmp.eq.s32.totalorder %v80_v45, %v1524_v36 }
  0x8f   :  { %vm1153_vm14 = vmpackc.low %vm135_vm12, %vm134_vm13 }
  0x90   :  { %1256 = vmatprep.mubr.msk.bf16.mxu0 %vm1153_vm14, %v1381_v39 }
  0x91   :  { %v89_v46 = vpop.permute.xlu1 %88  ;;  %v86_v47 = vpop.permute.xlu0 %85 }
  0x92   :  { %vm137_vm15 = vcmp.eq.s32.totalorder %v89_v46, %v1524_v36  ;;  %vm136_vm0 = vcmp.eq.s32.totalorder %v86_v47, %v1524_v36 }
  0x93   :  { %vm1155_vm1 = vmpackc.low %vm137_vm15, %vm136_vm0 }
  0x95   :  { %v95_v48 = vpop.permute.xlu1 %94  ;;  %v92_v49 = vpop.permute.xlu0 %91 }
  0x96   :  { %vm139_vm2 = vcmp.eq.s32.totalorder %v95_v48, %v1524_v36  ;;  %1257 = vmatmul.mubr.msk.bf16.gmra.mxu0 %vm1155_vm1, %v1381_v39  ;;  %vm138_vm3 = vcmp.eq.s32.totalorder %v92_v49, %v1524_v36 }
  0x97   :  { %vm1157_vm4 = vmpackc.low %vm139_vm2, %vm138_vm3 }
  0x98   :  { %1260 = vmatprep.mubr.msk.bf16.mxu0 %vm1157_vm4, %v1381_v39  ;;  %vm524_vm4 = vcmask 1046528  }
  0x99   :  { %v101_v50 = vpop.permute.xlu1 %100  ;;  %v98_v51 = vpop.permute.xlu0 %97 }
  0x9a   :  { %vm141_vm5 = vcmp.eq.s32.totalorder %v101_v50, %v1524_v36  ;;  %vm140_vm6 = vcmp.eq.s32.totalorder %v98_v51, %v1524_v36 }
  0x9b   :  { %vm1159_vm7 = vmpackc.low %vm141_vm5, %vm140_vm6  ;;  %vm395_vm5 = vsmask.f32 7424  ;;  %vm565_vm6 = vsmask.f32 6400 }
  0x9d   :  { %v107_v52 = vpop.permute.xlu1 %106  ;;  %v104_v53 = vpop.permute.xlu0 %103 }
  0x9e   :  { %vm143_vm8 = vcmp.eq.s32.totalorder %v107_v52, %v1524_v36  ;;  %1261 = vmatmul.mubr.msk.bf16.gmra.mxu0 %vm1159_vm7, %v1381_v39  ;;  %vm142_vm9 = vcmp.eq.s32.totalorder %v104_v53, %v1524_v36  ;;  %vm654_vm7 = vcmask 261120  }
  0x9f   :  { %vm1161_vm10 = vmpackc.low %vm143_vm8, %vm142_vm9  ;;  %vm671_vm8 = vcmask 523264   ;;  %vm688_vm9 = vcmask 785408  }
  0xa0   :  { %1264 = vmatprep.mubr.msk.bf16.mxu0 %vm1161_vm10, %v1381_v39  ;;  %vm1386_vm10 = vmmov 0  }
  0xa1   :  { %v113_v54 = vpop.permute.xlu1 %112  ;;  %v110_v55 = vpop.permute.xlu0 %109 }
  0xa2   :  { %vm145_vm11 = vcmp.eq.s32.totalorder %v113_v54, %v1524_v36  ;;  %vm144_vm12 = vcmp.eq.s32.totalorder %v110_v55, %v1524_v36 }
  0xa3   :  { %vm1163_vm13 = vmpackc.low %vm145_vm11, %vm144_vm12  ;;  %vm1018_vm11 = vcmask 1041409   ;;  %vm1020_vm12 = vcmask 1042434  }
  0xa5   :  { %v119_v56 = vpop.permute.xlu1 %118  ;;  %v116_v57 = vpop.permute.xlu0 %115 }
  0xa6   :  { %vm147_vm14 = vcmp.eq.s32.totalorder %v119_v56, %v1524_v36  ;;  %1265 = vmatmul.mubr.msk.bf16.gmra.mxu0 %vm1163_vm13, %v1381_v39  ;;  %vm146_vm15 = vcmp.eq.s32.totalorder %v116_v57, %v1524_v36  ;;  %vm1022_vm13 = vcmask 1043459  }
  0xa7   :  { %vm1165_vm0 = vmpackc.low %vm147_vm14, %vm146_vm15  ;;  %vm1024_vm14 = vcmask 1044484   ;;  %vm1026_vm15 = vcmask 1045509  }
  0xa8   :  { %1268 = vmatprep.mubr.msk.bf16.mxu0 %vm1165_vm0, %v1381_v39  ;;  %vm1028_vm0 = vcmask 1046534  }
  0xa9   :  { %v125_v58 = vpop.permute.xlu1 %124  ;;  %v122_v59 = vpop.permute.xlu0 %121 }
  0xaa   :  { %vm149_vm1 = vcmp.eq.s32.totalorder %v125_v58, %v1524_v36  ;;  %vm148_vm2 = vcmp.eq.s32.totalorder %v122_v59, %v1524_v36 }
  0xab   :  { %vm1167_vm3 = vmpackc.low %vm149_vm1, %vm148_vm2  ;;  %vm1030_vm1 = vcmask 1047559  }
  0xae   :  { %1269 = vmatmul.mubr.msk.bf16.gmra.mxu0 %vm1167_vm3, %v1381_v39 }
 0x146   :  { %v1250_v1 = vpop.f32.mrf.mxu0 }
 0x147   :  { %v380_v4 = vpack.c.bf16 %v1250_v1, %v1250_v1 }
 0x148   :  { %v284_v2 = vpop.f32.mrf.mxu0 }
 0x149   :  { %v404_v9 = vshll.u32 %v380_v4, 16  ;;  %v569_v10 = vshrl.u32 %v380_v4, 16  ;;  %v526_v12 = vrot.slane %v380_v4, 1 }
 0x14a   :  { %v1251_v5 = vpop.f32.mrf.mxu0 }
 0x14b   :  { %v571_v22 = vrot.slane %v569_v10, 1  ;;  %v572_v23 = vrot.slane %v404_v9, 2  ;;  %v406_v28 = vrot.slane %v404_v9, 1 }
 0x14c   :  { %v287_v6 = vpop.f32.mrf.mxu0 }
 0x14d   :  { %v1571_v8 = vpack.c.bf16 %v287_v6, %v284_v2  ;;  %v573_v35 = vor.u32 %v572_v23, %v571_v22 }
 0x14e   :  { %v1254_v11 = vpop.f32.mrf.mxu0 }
 0x14f   :  { %v399_v13 = vshll.u32 %v1571_v8, 16  ;;  %v525_v14 = vrot.slane %v1571_v8, 1  ;;  %v397_v15 = vshrl.u32 %v1571_v8, 16 }
 0x150   :  { %v300_v16 = vpop.f32.mrf.mxu0 }
 0x151   :  { %v1576_v17 = vpack.c.bf16 %v300_v16, %v1251_v5  ;;  %v527_v18 = vsel %vm524_vm4, %v525_v14, %v526_v12  ;;  %v401_v19 = vrot.slane %v399_v13, 1  ;;  %v566_v20 = vrot.slane %v397_v15, 1 }
 0x152   :  { %549 = vrot.lane.b32.xlu0 %v527_v18, %s1382_s10  ;;  %v1255_v24 = vpop.f32.mrf.mxu0  ;;  %v567_v25 = vrot.slane %v399_v13, 2 }
 0x153   :  { %v411_v26 = vshll.u32 %v1576_v17, 16  ;;  %v402_v27 = vor.u32 %v401_v19, %v397_v15  ;;  %v1584_v29 = vpack.c.bf16 %v1255_v24, %v1254_v11  ;;  %v528_v36 = vrot.slane %v1576_v17, 1 }
 0x154   :  { %v303_v30 = vpop.f32.mrf.mxu0  ;;  %v568_v31 = vor.u32 %v567_v25, %v566_v20  ;;  %v409_v37 = vshrl.u32 %v1576_v17, 16 }
 0x155   :  { %v382_v32 = vpack.c.bf16 %v303_v30, %v303_v30  ;;  %v407_v33 = vsel %vm395_vm5, %v402_v27, %v406_v28  ;;  %v413_v41 = vrot.slane %v411_v26, 1  ;;  %v423_v42 = vshll.u32 %v1584_v29, 16 }
 0x156   :  { %492 = vrot.lane.b32.xlu0 %v407_v33, %s1383_s2  ;;  %v1258_v34 = vpop.f32.mrf.mxu0  ;;  %v574_v44 = vsel %vm565_vm6, %v568_v31, %v573_v35  ;;  %v575_v51 = vrot.slane %v409_v37, 1  ;;  %v576_v52 = vrot.slane %v411_v26, 2  ;;  %v531_v58 = vrot.slane %v1584_v29, 1 }
 0x157   :  { %v416_v38 = vshll.u32 %v382_v32, 16  ;;  %v529_v39 = vrot.slane %v382_v32, 1  ;;  %v578_v40 = vshrl.u32 %v382_v32, 16  ;;  %v414_v56 = vor.u32 %v413_v41, %v409_v37 }
 0x158   :  { %v316_v43 = vpop.f32.mrf.mxu0  ;;  %v421_v59 = vshrl.u32 %v1584_v29, 16  ;;  %v425_v60 = vrot.slane %v423_v42, 1  ;;  %v577_v5 = vor.u32 %v576_v52, %v575_v51  ;;  %v585_v7 = vrot.slane %v423_v42, 2 }
 0x159   :  { %v580_v45 = vrot.slane %v578_v40, 1  ;;  %v581_v46 = vrot.slane %v416_v38, 2  ;;  %v384_v47 = vpack.c.bf16 %v316_v43, %v316_v43  ;;  %v530_v48 = vsel %vm524_vm4, %v528_v36, %v529_v39 }
 0x15a   :  { %638 = vrot.lane.b32.xlu0 %v574_v44, %s1384_s11  ;;  %551 = vrot.lane.b32.xlu1 %v530_v48, %s1382_s10  ;;  %v1259_v49 = vpop.f32.mrf.mxu0  ;;  %v418_v50 = vrot.slane %v416_v38, 1  ;;  %v426_v11 = vor.u32 %v425_v60, %v421_v59  ;;  %v584_v12 = vrot.slane %v421_v59, 1 }
 0x15b   :  { %v428_v53 = vshll.u32 %v384_v47, 16  ;;  %v532_v54 = vrot.slane %v384_v47, 1  ;;  %v587_v55 = vshrl.u32 %v384_v47, 16  ;;  %v386_v61 = vpack.c.bf16 %v1259_v49, %v1259_v49 }
 0x15c   :  { %v319_v57 = vpop.f32.mrf.mxu0  ;;  %v419_v62 = vsel %vm395_vm5, %v414_v56, %v418_v50  ;;  %v582_v63 = vor.u32 %v581_v46, %v580_v45  ;;  %v586_v26 = vor.u32 %v585_v7, %v584_v12 }
 0x15d   :  { %v589_v0 = vrot.slane %v587_v55, 1  ;;  %v590_v1 = vrot.slane %v428_v53, 2  ;;  %v1598_v2 = vpack.c.bf16 %v1258_v34, %v319_v57  ;;  %v533_v3 = vsel %vm524_vm4, %v531_v58, %v532_v54 }
 0x15e   :  { %494 = vrot.lane.b32.xlu1 %v419_v62, %s1383_s2  ;;  %v1262_v4 = vpop.f32.mrf.mxu0  ;;  %553 = vrot.lane.b32.xlu0 %v533_v3, %s1382_s10  ;;  %v430_v6 = vrot.slane %v428_v53, 1  ;;  %v440_v14 = vshll.u32 %v386_v61, 16  ;;  %v596_v15 = vshrl.u32 %v386_v61, 16  ;;  %v583_v16 = vsel %vm565_vm6, %v577_v5, %v582_v63 }
 0x15f   :  { %v435_v9 = vshll.u32 %v1598_v2, 16  ;;  %v433_v13 = vshrl.u32 %v1598_v2, 16  ;;  %v534_v18 = vrot.slane %v1598_v2, 1  ;;  %v388_v19 = vpack.c.bf16 %v1262_v4, %v1262_v4 }
 0x160   :  { %v332_v10 = vpop.f32.mrf.mxu0  ;;  %v431_v20 = vsel %vm395_vm5, %v426_v11, %v430_v6  ;;  %v591_v22 = vor.u32 %v590_v1, %v589_v0  ;;  %v535_v24 = vrot.slane %v386_v61, 1  ;;  %v599_v30 = vrot.slane %v440_v14, 2 }
 0x161   :  { %v437_v23 = vrot.slane %v435_v9, 1  ;;  %v593_v27 = vrot.slane %v433_v13, 1  ;;  %v594_v28 = vrot.slane %v435_v9, 2  ;;  %v598_v34 = vrot.slane %v596_v15, 1 }
 0x162   :  { %640 = vrot.lane.b32.xlu1 %v583_v16, %s1384_s11  ;;  %v1263_v21 = vpop.f32.mrf.mxu0  ;;  %496 = vrot.lane.b32.xlu0 %v431_v20, %s1383_s2  ;;  %v536_v32 = vsel %vm524_vm4, %v534_v18, %v535_v24  ;;  %v452_v35 = vshll.u32 %v388_v19, 16  ;;  %v538_v36 = vrot.slane %v388_v19, 1  ;;  %v592_v37 = vsel %vm565_vm6, %v586_v26, %v591_v22 }
 0x163   :  { %v438_v33 = vor.u32 %v437_v23, %v433_v13  ;;  %v442_v40 = vrot.slane %v440_v14, 1  ;;  %v605_v43 = vshrl.u32 %v388_v19, 16  ;;  %v595_v45 = vor.u32 %v594_v28, %v593_v27 }
 0x164   :  { %v335_v25 = vpop.f32.mrf.mxu0  ;;  %v600_v54 = vor.u32 %v599_v30, %v598_v34  ;;  %v454_v56 = vrot.slane %v452_v35, 1  ;;  %v608_v58 = vrot.slane %v452_v35, 2 }
 0x165   :  { %v1610_v31 = vpack.c.bf16 %v335_v25, %v332_v10  ;;  %v443_v47 = vsel %vm395_vm5, %v438_v33, %v442_v40  ;;  %v607_v57 = vrot.slane %v605_v43, 1 }
 0x166   :  { %555 = vrot.lane.b32.xlu1 %v536_v32, %s1382_s10  ;;  %v1266_v38 = vpop.f32.mrf.mxu0  ;;  %642 = vrot.lane.b32.xlu0 %v592_v37, %s1384_s11  ;;  %v601_v62 = vsel %vm565_vm6, %v595_v45, %v600_v54 }
 0x167   :  { %v447_v39 = vshll.u32 %v1610_v31, 16  ;;  %v537_v41 = vrot.slane %v1610_v31, 1  ;;  %v445_v42 = vshrl.u32 %v1610_v31, 16  ;;  %v609_v12 = vor.u32 %v608_v58, %v607_v57 }
 0x168   :  { %v348_v44 = vpop.f32.mrf.mxu0 }
 0x169   :  { %v1619_v46 = vpack.c.bf16 %v348_v44, %v1263_v21  ;;  %v539_v48 = vsel %vm524_vm4, %v537_v41, %v538_v36  ;;  %v449_v49 = vrot.slane %v447_v39, 1  ;;  %v602_v51 = vrot.slane %v445_v42, 1 }
 0x16a   :  { %498 = vrot.lane.b32.xlu1 %v443_v47, %s1383_s2  ;;  %v1267_v50 = vpop.f32.mrf.mxu0  ;;  %v603_v52 = vrot.slane %v447_v39, 2  ;;  %557 = vrot.lane.b32.xlu0 %v539_v48, %s1382_s10 }
 0x16b   :  { %v459_v53 = vshll.u32 %v1619_v46, 16  ;;  %v450_v55 = vor.u32 %v449_v49, %v445_v42  ;;  %v1626_v59 = vpack.c.bf16 %v1267_v50, %v1266_v38  ;;  %v540_v3 = vrot.slane %v1619_v46, 1 }
 0x16c   :  { %v351_v60 = vpop.f32.mrf.mxu0  ;;  %v604_v1 = vor.u32 %v603_v52, %v602_v51  ;;  %v457_v4 = vshrl.u32 %v1619_v46, 16 }
 0x16d   :  { %v390_v61 = vpack.c.bf16 %v351_v60, %v351_v60  ;;  %v455_v63 = vsel %vm395_vm5, %v450_v55, %v454_v56  ;;  %v461_v9 = vrot.slane %v459_v53, 1  ;;  %v471_v10 = vshll.u32 %v1626_v59, 16 }
 0x16e   :  { %644 = vrot.lane.b32.xlu1 %v601_v62, %s1384_s11  ;;  %v1270_v0 = vpop.f32.mrf.mxu0  ;;  %500 = vrot.lane.b32.xlu0 %v455_v63, %s1383_s2  ;;  %v610_v18 = vsel %vm565_vm6, %v604_v1, %v609_v12  ;;  %v611_v21 = vrot.slane %v457_v4, 1  ;;  %v612_v22 = vrot.slane %v459_v53, 2  ;;  %v543_v28 = vrot.slane %v1626_v59, 1 }
 0x16f   :  { %v464_v5 = vshll.u32 %v390_v61, 16  ;;  %v541_v6 = vrot.slane %v390_v61, 1  ;;  %v614_v7 = vshrl.u32 %v390_v61, 16  ;;  %v462_v26 = vor.u32 %v461_v9, %v457_v4 }
 0x170   :  { %v364_v11 = vpop.f32.mrf.mxu0  ;;  %v469_v30 = vshrl.u32 %v1626_v59, 16  ;;  %v473_v32 = vrot.slane %v471_v10, 1  ;;  %v613_v40 = vor.u32 %v612_v22, %v611_v21  ;;  %v621_v45 = vrot.slane %v471_v10, 2 }
 0x171   :  { %v616_v13 = vrot.slane %v614_v7, 1  ;;  %v617_v14 = vrot.slane %v464_v5, 2  ;;  %v392_v15 = vpack.c.bf16 %v364_v11, %v364_v11  ;;  %v542_v16 = vsel %vm524_vm4, %v540_v3, %v541_v6 }
 0x172   :  { %559 = vrot.lane.b32.xlu1 %v542_v16, %s1382_s10  ;;  %v1271_v19 = vpop.f32.mrf.mxu0  ;;  %v466_v20 = vrot.slane %v464_v5, 1  ;;  %646 = vrot.lane.b32.xlu0 %v610_v18, %s1384_s11  ;;  %v474_v43 = vor.u32 %v473_v32, %v469_v30  ;;  %v620_v44 = vrot.slane %v469_v30, 1 }
 0x173   :  { %v476_v23 = vshll.u32 %v392_v15, 16  ;;  %v544_v24 = vrot.slane %v392_v15, 1  ;;  %v623_v25 = vshrl.u32 %v392_v15, 16  ;;  %v618_v34 = vor.u32 %v617_v14, %v616_v13 }
 0x174   :  { %v367_v27 = vpop.f32.mrf.mxu0  ;;  %v467_v33 = vsel %vm395_vm5, %v462_v26, %v466_v20  ;;  %v394_v39 = vpack.c.bf16 %v1271_v19, %v1271_v19  ;;  %v622_v56 = vor.u32 %v621_v45, %v620_v44 }
 0x175   :  { %v625_v35 = vrot.slane %v623_v25, 1  ;;  %v626_v36 = vrot.slane %v476_v23, 2  ;;  %v1642_v37 = vpack.c.bf16 %v1270_v0, %v367_v27  ;;  %v545_v38 = vsel %vm524_vm4, %v543_v28, %v544_v24 }
 0x176   :  { %502 = vrot.lane.b32.xlu1 %v467_v33, %s1383_s2  ;;  %561 = vrot.lane.b32.xlu0 %v545_v38, %s1382_s10  ;;  %v478_v41 = vrot.slane %v476_v23, 1  ;;  %v619_v47 = vsel %vm565_vm6, %v613_v40, %v618_v34  ;;  %v488_v53 = vshll.u32 %v394_v39, 16  ;;  %v547_v54 = vrot.slane %v394_v39, 1 }
 0x177   :  { %v483_v42 = vshll.u32 %v1642_v37, 16  ;;  %v546_v48 = vrot.slane %v1642_v37, 1  ;;  %v481_v49 = vshrl.u32 %v1642_v37, 16  ;;  %v627_v51 = vor.u32 %v626_v36, %v625_v35 }
 0x178   :  { %v479_v50 = vsel %vm395_vm5, %v474_v43, %v478_v41  ;;  %v632_v55 = vshrl.u32 %v394_v39, 16  ;;  %v635_v0 = vrot.slane %v488_v53, 2  ;;  %v490_v1 = vrot.slane %v488_v53, 1 }
 0x179   :  { %v485_v52 = vrot.slane %v483_v42, 1  ;;  %v548_v57 = vsel %vm524_vm4, %v546_v48, %v547_v54  ;;  %v629_v60 = vrot.slane %v481_v49, 1  ;;  %v630_v61 = vrot.slane %v483_v42, 2 }
 0x17a   :  { %648 = vrot.lane.b32.xlu1 %v619_v47, %s1384_s11  ;;  %504 = vrot.lane.b32.xlu0 %v479_v50, %s1383_s2  ;;  %v628_v62 = vsel %vm565_vm6, %v622_v56, %v627_v51  ;;  %v634_v63 = vrot.slane %v632_v55, 1  ;;  %v1385_v55 = vmov 0.0   ;;  %v1351_v56 = vld [vmem:[%s1776_s5 + $0x30] sm:$0xff]  }
 0x17b   :  { %v486_v58 = vor.u32 %v485_v52, %v481_v49  ;;  %v631_v4 = vor.u32 %v630_v61, %v629_v60  ;;  %1304 = vmatprep.subr.bf16.mxu1 %v1385_v55  ;;  %v1355_v60 = vld [vmem:[%s1776_s5 + $0x10] sm:$0xff]   ;;  %v1356_v61 = vld [vmem:[%s1776_s5 + $0x8] sm:$0xff]  }
 0x17c   :  { %v636_v5 = vor.u32 %v635_v0, %v634_v63 }
 0x17d   :  { %v491_v3 = vsel %vm395_vm5, %v486_v58, %v490_v1  ;;  %v1354_v58 = vld [vmem:[%s1776_s5 + $0x18] sm:$0xff]  }
 0x17e   :  { %563 = vrot.lane.b32.xlu1 %v548_v57, %s1382_s10  ;;  %650 = vrot.lane.b32.xlu0 %v628_v62, %s1384_s11  ;;  %v637_v6 = vsel %vm565_vm6, %v631_v4, %v636_v5  ;;  %v1353_v57 = vld [vmem:[%s1776_s5 + $0x20] sm:$0xff]   ;;  %s1358_s10 = scalar_lea.vmem %s1130_s9, 128 }
 0x17f   :  { %v1357_v62 = vld [vmem:[%s1776_s5] sm:$0xff]   ;;  %p1359_p0 = scmp.ne.s32.totalorder %s1130_s9, %s1358_s10  ;;  %p1364_p2 = scmp.lt.s32.totalorder %s1358_s10, %s1358_s10 }
 0x180   :  { %v1721_v4 = vld [vmem:[%s1774_s3] ss:$0 sm:$0xff] }
 0x181   :  { %p1365_p3 = por %p1364_p2, %p1363_p1 }
 0x182   :  { %506 = vrot.lane.b32.xlu1 %v491_v3, %s1383_s2 }
 0x183   :  { %p1366_p4 = pnand %p1365_p3, %p1359_p0 }
 0x186   :  { %652 = vrot.lane.b32.xlu1 %v637_v6, %s1384_s11 }
 0x1c4   :  { %v550_v7 = vpop.permute.xlu0 %549 }
 0x1c8   :  { %v493_v9 = vpop.permute.xlu0 %492 }
 0x1c9   :  { %v656_v10 = vsel %vm654_vm7, %v1571_v8, %v493_v9 }
 0x1ca   :  { %v673_v13 = vsel %vm671_vm8, %v656_v10, %v550_v7 }
 0x1cc   :  { %v552_v11 = vpop.permute.xlu1 %551  ;;  %v639_v12 = vpop.permute.xlu0 %638 }
 0x1cd   :  { %v690_v14 = vsel %vm688_vm9, %v673_v13, %v639_v12 }
 0x1ce   :  { %1288 = vmatprep.mubr.bf16.mxu1 %v690_v14 }
 0x1d0   :  { %v495_v15 = vpop.permute.xlu1 %494  ;;  %v554_v18 = vpop.permute.xlu0 %553 }
 0x1d1   :  { %v658_v16 = vsel %vm654_vm7, %v1576_v17, %v495_v15 }
 0x1d2   :  { %v675_v20 = vsel %vm671_vm8, %v658_v16, %v552_v11 }
 0x1d4   :  { %v641_v19 = vpop.permute.xlu1 %640  ;;  %v497_v21 = vpop.permute.xlu0 %496 }
 0x1d5   :  { %v693_v8 = vsel %vm688_vm9, %v675_v20, %v641_v19  ;;  %v660_v22 = vsel %vm654_vm7, %v1584_v29, %v497_v21 }
 0x1d6   :  { %1289 = vmatmul.mubr.bf16.vlgmr.msra.gmra.mxu1 %v693_v8  ;;  %v677_v25 = vsel %vm671_vm8, %v660_v22, %v554_v18  ;;  %v1731_v18 = vld [vmem:[%s1775_s4 + $0x8] sm:$0xff] }
 0x1d8   :  { %v556_v23 = vpop.permute.xlu1 %555  ;;  %v643_v24 = vpop.permute.xlu0 %642 }
 0x1d9   :  { %v696_v26 = vsel %vm688_vm9, %v677_v25, %v643_v24 }
 0x1da   :  { %1292 = vmatprep.mubr.bf16.mxu1 %v696_v26 }
 0x1dc   :  { %v499_v27 = vpop.permute.xlu1 %498  ;;  %v558_v28 = vpop.permute.xlu0 %557 }
 0x1dd   :  { %v662_v17 = vsel %vm654_vm7, %v1598_v2, %v499_v27 }
 0x1de   :  { %v679_v32 = vsel %vm671_vm8, %v662_v17, %v556_v23  ;;  %v1739_v23 = vld [vmem:[%s1775_s4] sm:$0xff] }
 0x1e0   :  { %v645_v30 = vpop.permute.xlu1 %644  ;;  %v501_v33 = vpop.permute.xlu0 %500 }
 0x1e1   :  { %v699_v34 = vsel %vm688_vm9, %v679_v32, %v645_v30  ;;  %v664_v29 = vsel %vm654_vm7, %v1610_v31, %v501_v33 }
 0x1e2   :  { %1293 = vmatmul.mubr.bf16.gmra.mxu1 %v699_v34  ;;  %v681_v38 = vsel %vm671_vm8, %v664_v29, %v558_v28 }
 0x1e4   :  { %v560_v35 = vpop.permute.xlu1 %559  ;;  %v647_v36 = vpop.permute.xlu0 %646 }
 0x1e5   :  { %v702_v39 = vsel %vm688_vm9, %v681_v38, %v647_v36 }
 0x1e6   :  { %1296 = vmatprep.mubr.bf16.mxu1 %v702_v39 }
 0x1e8   :  { %v503_v40 = vpop.permute.xlu1 %502  ;;  %v562_v41 = vpop.permute.xlu0 %561 }
 0x1e9   :  { %v666_v2 = vsel %vm654_vm7, %v1619_v46, %v503_v40 }
 0x1ea   :  { %v683_v43 = vsel %vm671_vm8, %v666_v2, %v560_v35 }
 0x1ec   :  { %v649_v42 = vpop.permute.xlu1 %648  ;;  %v505_v44 = vpop.permute.xlu0 %504 }
 0x1ed   :  { %v705_v45 = vsel %vm688_vm9, %v683_v43, %v649_v42  ;;  %v668_v31 = vsel %vm654_vm7, %v1626_v59, %v505_v44  ;;  %v1350_v59 = vld [vmem:[%s1776_s5 + $0x38] sm:$0xff]  }
 0x1ee   :  { %1297 = vmatmul.mubr.bf16.gmra.mxu1 %v705_v45  ;;  %v685_v49 = vsel %vm671_vm8, %v668_v31, %v562_v41 }
 0x1ef   :  { %1305 = vmatpush3.bf16.msra.mxu1 %v1350_v59 }
 0x1f0   :  { %v564_v47 = vpop.permute.xlu1 %563  ;;  %v651_v48 = vpop.permute.xlu0 %650  ;;  %1306 = vmatprep.subr.bf16.mxu1 %v1385_v55 }
 0x1f1   :  { %v708_v50 = vsel %vm688_vm9, %v685_v49, %v651_v48 }
 0x1f2   :  { %1300 = vmatprep.mubr.bf16.mxu1 %v708_v50 }
 0x1f3   :  { %1307 = vmatpush3.bf16.msra.mxu1 %v1351_v56 }
 0x1f4   :  { %v507_v51 = vpop.permute.xlu1 %506  ;;  %1308 = vmatprep.subr.bf16.mxu1 %v1385_v55 }
 0x1f5   :  { %v670_v46 = vsel %vm654_vm7, %v1642_v37, %v507_v51  ;;  %v1352_v37 = vld [vmem:[%s1776_s5 + $0x28] sm:$0xff]  }
 0x1f6   :  { %v687_v53 = vsel %vm671_vm8, %v670_v46, %v564_v47 }
 0x1f7   :  { %1309 = vmatpush3.bf16.msra.mxu1 %v1352_v37 }
 0x1f8   :  { %v653_v52 = vpop.permute.xlu1 %652  ;;  %1310 = vmatprep.subr.bf16.mxu1 %v1385_v55 }
 0x1f9   :  { %v711_v54 = vsel %vm688_vm9, %v687_v53, %v653_v52 }
 0x1fa   :  { %1301 = vmatmul.mubr.bf16.gmra.mxu1 %v711_v54 }
 0x1fb   :  { %1311 = vmatpush3.bf16.msra.mxu1 %v1353_v57  ;;  %1320 = vmatprep.mubr.msk.bf16.mxu1 %vm1386_vm10, %v1385_v55 }
 0x1fc   :  { %1312 = vmatprep.subr.bf16.mxu1 %v1385_v55 }
 0x1ff   :  { %1313 = vmatpush3.bf16.msra.mxu1 %v1354_v58 }
 0x200   :  { %1314 = vmatprep.subr.bf16.mxu1 %v1385_v55 }
 0x203   :  { %1315 = vmatpush3.bf16.msra.mxu1 %v1355_v60 }
 0x204   :  { %1316 = vmatprep.subr.bf16.mxu1 %v1385_v55 }
 0x207   :  { %1317 = vmatpush3.bf16.msra.mxu1 %v1356_v61 }
 0x208   :  { %1318 = vmatprep.subr.bf16.mxu1 %v1385_v55 }
 0x20b   :  { %1319 = vmatpush3.bf16.msra.mxu1 %v1357_v62 }
 0x296   :  { %v1290_v63 = vpop.f32.mrf.mxu1 }
 0x297   :  { %v827_v10 = vadd.f32 %v1290_v63, %v1721_v4 }
 0x298   :  { %v818_v0 = vpop.f32.mrf.mxu1 }
 0x299   :  { %v819_v6 = vadd.f32 %v1721_v4, %v818_v0  ;;  %v883_v19 = vmax.f32 %v827_v10, 0.0 }
 0x29a   :  { %v1291_v1 = vpop.f32.mrf.mxu1 }
 0x29b   :  { %v830_v7 = vadd.f32 %v1291_v1, %v1721_v4  ;;  %v881_v14 = vmax.f32 %v819_v6, 0.0  ;;  %v901_v30 = vmul.f32 %v1739_v23, %v883_v19 }
 0x29c   :  { %v821_v3 = vpop.f32.mrf.mxu1 }
 0x29d   :  { %v822_v5 = vadd.f32 %v1721_v4, %v821_v3  ;;  %v884_v15 = vmax.f32 %v830_v7, 0.0  ;;  %v899_v26 = vmul.f32 %v1739_v23, %v881_v14 }
 0x29f   :  { %v882_v11 = vmax.f32 %v822_v5, 0.0  ;;  %v902_v27 = vmul.f32 %v1731_v18, %v884_v15 }
 0x2a1   :  { %v900_v20 = vmul.f32 %v1731_v18, %v882_v11  ;;  %v922_v35 = vmax.f32 %v901_v30, %v902_v27 }
 0x2a2   :  { %v1294_v9 = vpop.f32.mrf.mxu1 }
 0x2a3   :  { %v843_v21 = vadd.f32 %v1294_v9, %v1721_v4  ;;  %v915_v32 = vmax.f32 %v899_v26, %v900_v20  ;;  %v923_v44 = vrot.slane %v922_v35, 4 }
 0x2a4   :  { %v834_v12 = vpop.f32.mrf.mxu1 }
 0x2a5   :  { %v835_v13 = vadd.f32 %v1721_v4, %v834_v12  ;;  %v887_v33 = vmax.f32 %v843_v21, 0.0  ;;  %v916_v2 = vrot.slane %v915_v32, 4  ;;  %v924_v59 = vmax.f32 %v922_v35, %v923_v44 }
 0x2a6   :  { %v1295_v16 = vpop.f32.mrf.mxu1 }
 0x2a7   :  { %v846_v8 = vadd.f32 %v1295_v16, %v1721_v4  ;;  %v885_v24 = vmax.f32 %v835_v13, 0.0  ;;  %v905_v41 = vmul.f32 %v1739_v23, %v887_v33  ;;  %v917_v50 = vmax.f32 %v915_v32, %v916_v2 }
 0x2a8   :  { %v837_v22 = vpop.f32.mrf.mxu1  ;;  %v925_v0 = vrot.slane %v924_v59, 2 }
 0x2a9   :  { %v838_v25 = vadd.f32 %v1721_v4, %v837_v22  ;;  %v888_v17 = vmax.f32 %v846_v8, 0.0  ;;  %v903_v34 = vmul.f32 %v1739_v23, %v885_v24  ;;  %v918_v58 = vrot.slane %v917_v50, 2 }
 0x2aa   :  { %v926_v13 = vmax.f32 %v924_v59, %v925_v0 }
 0x2ab   :  { %v886_v28 = vmax.f32 %v838_v25, 0.0  ;;  %v906_v36 = vmul.f32 %v1731_v18, %v888_v17  ;;  %v919_v7 = vmax.f32 %v917_v50, %v918_v58 }
 0x2ad   :  { %v904_v29 = vmul.f32 %v1731_v18, %v886_v28  ;;  %v936_v45 = vmax.f32 %v905_v41, %v906_v36  ;;  %v920_v21 = vrot.slane %v919_v7, 1  ;;  %v927_v28 = vrot.slane %v926_v13, 1 }
 0x2ae   :  { %v1298_v38 = vpop.f32.mrf.mxu1 }
 0x2af   :  { %v929_v39 = vmax.f32 %v903_v34, %v904_v29  ;;  %v859_v40 = vadd.f32 %v1298_v38, %v1721_v4  ;;  %v937_v55 = vrot.slane %v936_v45, 4  ;;  %v921_v35 = vmax.f32 %v919_v7, %v920_v21 }
 0x2b0   :  { %v850_v42 = vpop.f32.mrf.mxu1 }
 0x2b1   :  { %v930_v43 = vrot.slane %v929_v39, 4  ;;  %v851_v31 = vadd.f32 %v1721_v4, %v850_v42  ;;  %v891_v48 = vmax.f32 %v859_v40, 0.0  ;;  %v938_v1 = vmax.f32 %v936_v45, %v937_v55 }
 0x2b2   :  { %v1299_v47 = vpop.f32.mrf.mxu1  ;;  %v928_v42 = vmax.f32 %v926_v13, %v927_v28 }
 0x2b3   :  { %v862_v49 = vadd.f32 %v1299_v47, %v1721_v4  ;;  %v931_v46 = vmax.f32 %v929_v39, %v930_v43  ;;  %v889_v52 = vmax.f32 %v851_v31, 0.0  ;;  %v909_v56 = vmul.f32 %v1739_v23, %v891_v48 }
 0x2b4   :  { %v853_v51 = vpop.f32.mrf.mxu1  ;;  %v939_v14 = vrot.slane %v938_v1, 2  ;;  %v971_v31 = vpack.c.bf16 %v921_v35, %v921_v35 }
 0x2b5   :  { %v892_v53 = vmax.f32 %v862_v49, 0.0  ;;  %v854_v54 = vadd.f32 %v1721_v4, %v853_v51  ;;  %v932_v60 = vrot.slane %v931_v46, 2  ;;  %v907_v61 = vmul.f32 %v1739_v23, %v889_v52 }
 0x2b6   :  { %v940_v30 = vmax.f32 %v938_v1, %v939_v14  ;;  %v972_v51 = vpack.c.bf16 %v928_v42, %v928_v42  ;;  %v1010_v59 = vunpack.c.l.b16 %v971_v31 }
 0x2b7   :  { %v910_v37 = vmul.f32 %v1731_v18, %v892_v53  ;;  %v890_v57 = vmax.f32 %v854_v54, 0.0  ;;  %v933_v11 = vmax.f32 %v931_v46, %v932_v60 }
 0x2b8   :  { %v941_v43 = vrot.slane %v940_v30, 1 }
 0x2b9   :  { %v950_v62 = vmax.f32 %v909_v56, %v910_v37  ;;  %v908_v63 = vmul.f32 %v1731_v18, %v890_v57  ;;  %v934_v25 = vrot.slane %v933_v11, 1  ;;  %v1011_v37 = vunpack.c.l.b16 %v972_v51 }
 0x2ba   :  { %v1302_v3 = vpop.f32.mrf.mxu1  ;;  %v942_v46 = vmax.f32 %v940_v30, %v941_v43 }
 0x2bb   :  { %v951_v5 = vrot.slane %v950_v62, 4  ;;  %v943_v6 = vmax.f32 %v907_v61, %v908_v63  ;;  %v875_v9 = vadd.f32 %v1302_v3, %v1721_v4  ;;  %v935_v39 = vmax.f32 %v933_v11, %v934_v25 }
 0x2bc   :  { %v866_v10 = vpop.f32.mrf.mxu1  ;;  %v974_v57 = vpack.c.bf16 %v942_v46, %v942_v46 }
 0x2bd   :  { %v944_v12 = vrot.slane %v943_v6, 4  ;;  %v952_v15 = vmax.f32 %v950_v62, %v951_v5  ;;  %v867_v16 = vadd.f32 %v1721_v4, %v866_v10  ;;  %v895_v8 = vmax.f32 %v875_v9, 0.0 }
 0x2be   :  { %v1303_v19 = vpop.f32.mrf.mxu1  ;;  %v973_v48 = vpack.c.bf16 %v935_v39, %v935_v39  ;;  %v1019_v62 = vsel %vm1018_vm11, %v1011_v37, %v1010_v59  ;;  %v1013_v5 = vunpack.c.l.b16 %v974_v57 }
 0x2bf   :  { %v945_v20 = vmax.f32 %v943_v6, %v944_v12  ;;  %v878_v22 = vadd.f32 %v1303_v19, %v1721_v4  ;;  %v893_v27 = vmax.f32 %v867_v16, 0.0  ;;  %v953_v32 = vrot.slane %v952_v15, 2 }
 0x2c0   :  { %v869_v24 = vpop.f32.mrf.mxu1  ;;  %v913_v36 = vmul.f32 %v1739_v23, %v895_v8  ;;  %v1012_v55 = vunpack.c.l.b16 %v973_v48 }
 0x2c1   :  { %v946_v26 = vrot.slane %v945_v20, 2  ;;  %v870_v17 = vadd.f32 %v1721_v4, %v869_v24  ;;  %v896_v33 = vmax.f32 %v878_v22, 0.0  ;;  %v911_v2 = vmul.f32 %v1739_v23, %v893_v27  ;;  %v1178_v22 = vld [vmem:[%s1777_s6] ss:$0 sm:$0xff] }
 0x2c2   :  { %v954_v4 = vmax.f32 %v952_v15, %v953_v32  ;;  %v1021_v0 = vsel %vm1020_vm12, %v1012_v55, %v1019_v62 }
 0x2c3   :  { %v947_v34 = vmax.f32 %v945_v20, %v946_v26  ;;  %v894_v29 = vmax.f32 %v870_v17, 0.0  ;;  %v914_v38 = vmul.f32 %v1731_v18, %v896_v33  ;;  %v1023_v10 = vsel %vm1022_vm13, %v1013_v5, %v1021_v0 }
 0x2c4   :  { %v955_v52 = vrot.slane %v954_v4, 1 }
 0x2c5   :  { %v948_v40 = vrot.slane %v947_v34, 1  ;;  %v912_v41 = vmul.f32 %v1731_v18, %v894_v29  ;;  %v964_v44 = vmax.f32 %v913_v36, %v914_v38 }
 0x2c6   :  { %v956_v58 = vmax.f32 %v954_v4, %v955_v52 }
 0x2c7   :  { %v957_v45 = vmax.f32 %v911_v2, %v912_v41  ;;  %v965_v47 = vrot.slane %v964_v44, 4  ;;  %v949_v49 = vmax.f32 %v947_v34, %v948_v40 }
 0x2c8   :  { %v976_v6 = vpack.c.bf16 %v956_v58, %v956_v58 }
 0x2c9   :  { %v958_v50 = vrot.slane %v957_v45, 4  ;;  %v966_v53 = vmax.f32 %v964_v44, %v965_v47  ;;  %v975_v18 = vpack.c.bf16 %v949_v49, %v949_v49 }
 0x2ca   :  { %v1015_v14 = vunpack.c.l.b16 %v976_v6 }
 0x2cb   :  { %v959_v54 = vmax.f32 %v957_v45, %v958_v50  ;;  %v967_v23 = vrot.slane %v966_v53, 2  ;;  %v1014_v1 = vunpack.c.l.b16 %v975_v18 }
 0x2cd   :  { %v960_v56 = vrot.slane %v959_v54, 2  ;;  %v968_v60 = vmax.f32 %v966_v53, %v967_v23  ;;  %v1025_v12 = vsel %vm1024_vm14, %v1014_v1, %v1023_v10 }
 0x2ce   :  { %v1027_v19 = vsel %vm1026_vm15, %v1015_v14, %v1025_v12 }
 0x2cf   :  { %v961_v61 = vmax.f32 %v959_v54, %v960_v56  ;;  %v969_v63 = vrot.slane %v968_v60, 1 }
 0x2d1   :  { %v962_v3 = vrot.slane %v961_v61, 1  ;;  %v970_v7 = vmax.f32 %v968_v60, %v969_v63 }
 0x2d3   :  { %v963_v9 = vmax.f32 %v961_v61, %v962_v3  ;;  %v978_v11 = vpack.c.bf16 %v970_v7, %v970_v7 }
 0x2d5   :  { %v977_v13 = vpack.c.bf16 %v963_v9, %v963_v9  ;;  %v1017_v16 = vunpack.c.l.b16 %v978_v11 }
 0x2d7   :  { %v1016_v15 = vunpack.c.l.b16 %v977_v13 }
 0x2d9   :  { %v1029_v20 = vsel %vm1028_vm0, %v1016_v15, %v1027_v19 }
 0x2da   :  { %v1031_v21 = vsel %vm1030_vm1, %v1017_v16, %v1029_v20 }
 0x2db   :  { %v1032_v8 = vpack.c.b16 %v1031_v21, %v1031_v21 }
 0x2dd   :  { %1321 = vmatmul.mubr.bf16.vlgmr.msra.gmra.mxu1 %v1032_v8 }
 0x39d   :  { %v1116_v24 = vpop.f32.mrf.mxu1 }
 0x39e   :  { %v1117_v25 = vadd.f32 %v1178_v22, %v1116_v24 }
 0x39f   :  { %v1322_v26 = vpop.f32.mrf.mxu1 }
 0x3a0   :  { %1122 = vst [vmem:[#allocation2] sm:$0xff] %v1117_v25 }
 0x3a1   :  { %v1119_v27 = vpop.f32.mrf.mxu1 }
 0x3a2   :  { %1369 = shalt.err (!%p1366_p4)
}
 0x3a3   :  { %1132 = dma.vmem_to_hbm [thread:$0]  %s1130_s9, 128, %s1778_s7, [#allocation3]   ;;  %v1323_v17 = vpop.f32.mrf.mxu1 }
 0x3a4   :  { %1378 = dma.done.wait [#allocation3], 128  }
 0x3a5   :  { %1379 = vsyncadd [#allocation3], 4294967168 }
 0x3a6   :  { %1136 = vsyncpa [#allocation3], 1 }

</bundles_post_ra>
